<compile_context>
chip_gen: v5e
topology: v5e:2x2
jax: 0.10.0
libtpu: 0.0.40
codegen_flags: <defaults>
</compile_context>

<pallas_src>
import functools

import jax
import jax.numpy as jnp
from jax.experimental import pallas as pl
from jax.experimental.pallas import tpu as pltpu

D_IN, D_H1, D_H2, D_OUT = 21, 21, 10, 2
ALPHA = 0.47   # kept for documentation: for 2-class one-hot targets the per-row alpha weights
GAMMA = 5      # sum to (1-alpha)+alpha = 1, so alpha cancels out of the mean (see derivation).

# ---- packed parameter layout ----------------------------------------------------------------
# Weight slab: bf16 (64, 128); weight-block row starts aligned to 16 (bf16 sublane packing).
W_ROWS, W_COLS = 64, 128
R_W1 = 0           # rows  0..20, cols 0..20 : fc1 weight (in, out)
R_W2 = 32          # rows 32..52, cols 0..9  : fc2 weight
# Aux slab: f32 (8, 128): biases + folded fc3 difference column.
AUX_ROWS, AUX_COLS = 8, 128
A_B1 = 0           # row 0, cols 0..20 : fc1 bias
A_B2 = 1           # row 1, cols 0..9  : fc2 bias
A_W3D = 2          # row 2, cols 0..9  : w3[:,1] - w3[:,0]
A_B3D = 3          # row 3, col  0     : b3[1] - b3[0]


def _mlp_focal_kernel(feat_ref, cls_ref, w_ref, aux_ref, p1_ref, rloss_ref, *, n_valid):
    tn = feat_ref.shape[0]
    i = pl.program_id(0)

    # Rebuild the one-hot input in-kernel (VPU compare): 21x fewer HBM bytes than f32 one-hot.
    feat = feat_ref[...]                                             # (TN, 1) int32
    lane = jax.lax.broadcasted_iota(jnp.int32, (tn, D_IN), 1)
    x = (lane == feat).astype(jnp.bfloat16)                          # one-hot, exact in bf16

    # fc1 + ReLU  (bf16 operands on the MXU, f32 accumulate, f32 elementwise)
    w1 = w_ref[R_W1:R_W1 + D_IN, :D_H1]                              # (21, 21) bf16
    b1 = aux_ref[A_B1:A_B1 + 1, :D_H1]                               # (1, 21) f32
    h1 = jnp.maximum(jnp.dot(x, w1, preferred_element_type=jnp.float32) + b1, 0.0)

    # fc2 + ReLU
    w2 = w_ref[R_W2:R_W2 + D_H1, :D_H2]                              # (21, 10) bf16
    b2 = aux_ref[A_B2:A_B2 + 1, :D_H2]                               # (1, 10) f32
    h2 = jnp.maximum(
        jnp.dot(h1.astype(jnp.bfloat16), w2, preferred_element_type=jnp.float32) + b2, 0.0)

    # fc3 folded to a logit-difference column: d = z1 - z0 (tiny 10-lane f32 reduce)
    w3d = aux_ref[A_W3D:A_W3D + 1, :D_H2]                            # (1, 10) f32
    b3d = aux_ref[A_B3D:A_B3D + 1, 0:1]                              # (1, 1) f32
    d = jnp.sum(h2 * w3d, axis=-1, keepdims=True) + b3d              # (TN, 1)

    # 2-class softmax == sigmoid(d): p1 = 1/(1+exp(-d)); p0 = 1-p1 is assembled in the wrapper.
    p1 = pl.reciprocal(1.0 + jnp.exp(-d), approx=False)
    p1 = jnp.clip(p1, 0.0, 1.0)
    p1_ref[...] = p1

    # FocalLoss per row (exact 2-class / one-hot collapse; alpha weights sum to 1 per row).
    cls = cls_ref[...]                                               # (TN, 1) int32 in {0, 1}
    p_t = jnp.where(cls == 1, p1, 1.0 - p1)                          # prob of the true class
    bce = -jnp.maximum(jnp.log(p_t), -100.0)                         # torch clamps log at -100
    one_m = 1.0 - p_t
    g2 = one_m * one_m
    focal = g2 * g2 * one_m * bce                                    # (1-p_t)^5 * bce, no pow()

    # Mask padding rows so the wrapper can just sum all partials.
    row = i * tn + jax.lax.broadcasted_iota(jnp.int32, (tn, 1), 0)
    rloss_ref[...] = jnp.where(row < n_valid, focal, 0.0)


def pack_params(params):
    """Pack (w1,b1,w2,b2,w3,b3) into a bf16 weight slab + f32 aux slab (biases + folded fc3)."""
    w1, b1, w2, b2, w3, b3 = params
    w_slab = jnp.zeros((W_ROWS, W_COLS), jnp.bfloat16)
    w_slab = w_slab.at[R_W1:R_W1 + D_IN, :D_H1].set(w1.astype(jnp.bfloat16))
    w_slab = w_slab.at[R_W2:R_W2 + D_H1, :D_H2].set(w2.astype(jnp.bfloat16))
    aux = jnp.zeros((AUX_ROWS, AUX_COLS), jnp.float32)
    aux = aux.at[A_B1, :D_H1].set(b1.reshape(-1))
    aux = aux.at[A_B2, :D_H2].set(b2.reshape(-1))
    aux = aux.at[A_W3D, :D_H2].set(w3[:, 1] - w3[:, 0])
    b3f = b3.reshape(-1)
    aux = aux.at[A_B3D, 0].set(b3f[1] - b3f[0])
    return w_slab, aux


def _round_up(x, m):
    return (x + m - 1) // m * m


def mlp_forward(feat_idx, cls_idx, w_slab, aux_slab, *, tn=1024):
    """feat_idx: (N,) int32 one-hot category in [0,21); cls_idx: (N,) int32 class in {0,1}.
    Returns (loss, probs); probs == softmax(fc3(...)) with shape (N, 2) (the torch module's
    "logits" are post-softmax probabilities)."""
    N = int(feat_idx.shape[0])
    TN = min(tn, _round_up(N, 8))          # row tile; keep >= 256 for real batches (MXU M dim)
    Np = _round_up(N, TN)
    G = Np // TN

    feat = jnp.zeros((Np, 1), jnp.int32).at[:N, 0].set(feat_idx.astype(jnp.int32))
    cls = jnp.zeros((Np, 1), jnp.int32).at[:N, 0].set(cls_idx.astype(jnp.int32))

    row_spec = pl.BlockSpec((TN, 1), lambda i: (i, 0))
    resident = lambda r, c: pl.BlockSpec((r, c), lambda i: (0, 0))   # fetched once, stays in VMEM

    p1, row_loss = pl.pallas_call(
        functools.partial(_mlp_focal_kernel, n_valid=N),
        grid_spec=pltpu.PrefetchScalarGridSpec(
            num_scalar_prefetch=0,
            grid=(G,),
            in_specs=[
                row_spec,                               # (Np, 1) int32 feature indices
                row_spec,                               # (Np, 1) int32 class ids
                resident(W_ROWS, W_COLS),               # bf16 weight slab (16 KiB, resident)
                resident(AUX_ROWS, AUX_COLS),           # f32 bias/fc3-diff slab (4 KiB, resident)
            ],
            out_specs=[row_spec, row_spec],
        ),
        out_shape=(
            jax.ShapeDtypeStruct((Np, 1), jnp.float32),  # p1
            jax.ShapeDtypeStruct((Np, 1), jnp.float32),  # per-row focal partial (pad rows = 0)
        ),
        compiler_params=pltpu.CompilerParams(
            dimension_semantics=("parallel",),           # shard row blocks over v7x's 2 TCs
            vmem_limit_bytes=32 * 1024 * 1024,           # headroom beyond v5e's 16 MiB default
        ),
    )(feat, cls, w_slab, aux_slab)

    loss = jnp.sum(row_loss) / (N * D_OUT)               # mean over the N*2 focal elements
    p1 = p1[:N, 0]
    probs = jnp.stack([1.0 - p1, p1], axis=-1)           # (N, 2)
    return loss, probs


def init_params(key):
    """Deterministic init mimicking torch.nn.Linear (uniform +-1/sqrt(fan_in))."""
    def linear(k, fan_in, fan_out):
        kw, kb = jax.random.split(k)
        bound = 1.0 / (fan_in ** 0.5)
        w = jax.random.uniform(kw, (fan_in, fan_out), jnp.float32, -bound, bound)
        b = jax.random.uniform(kb, (1, fan_out), jnp.float32, -bound, bound)
        return w, b

    k1, k2, k3 = jax.random.split(key, 3)
    w1, b1 = linear(k1, D_IN, D_H1)
    w2, b2 = linear(k2, D_H1, D_H2)
    w3, b3 = linear(k3, D_H2, D_OUT)
    return (w1, b1, w2, b2, w3, b3)


def reference_forward(feat_idx, cls_idx, params):
    """Pure-JAX f32 replica of the torch module + FocalLoss (loose parity check)."""
    w1, b1, w2, b2, w3, b3 = params
    x = jax.nn.one_hot(feat_idx, D_IN, dtype=jnp.float32)
    t = jax.nn.one_hot(cls_idx, D_OUT, dtype=jnp.float32)
    h1 = jax.nn.relu(x @ w1 + b1)
    h2 = jax.nn.relu(h1 @ w2 + b2)
    p = jax.nn.softmax(h2 @ w3 + b3, axis=-1)
    at = jnp.where(t == 0.0, ALPHA, 1.0 - ALPHA)
    bce = -(t * jnp.maximum(jnp.log(p), -100.0)
            + (1.0 - t) * jnp.maximum(jnp.log(1.0 - p), -100.0))
    pt = jnp.exp(-bce)
    f = at * (1.0 - pt) ** GAMMA * bce
    return f.mean(), p


if __name__ == "__main__":
    key = jax.random.PRNGKey(0)
    kp, kx, kl = jax.random.split(key, 3)

    N = 200  # small batch; deliberately not a multiple of the tile to exercise padding/masking
    params = init_params(kp)
    w_slab, aux_slab = pack_params(params)

    feat_idx = jax.random.randint(kx, (N,), 0, D_IN, dtype=jnp.int32)   # one-hot category ids
    cls_idx = jax.random.randint(kl, (N,), 0, D_OUT, dtype=jnp.int32)   # binary class ids

    fwd = jax.jit(functools.partial(mlp_forward, tn=64))   # 4 row blocks of 64 (multi-block path)
    loss, probs = fwd(feat_idx, cls_idx, w_slab, aux_slab)
    jax.block_until_ready((loss, probs))

    assert probs.shape == (N, D_OUT)
    assert loss.shape == ()

    # Loose parity vs. an f32 pure-JAX replica (bf16 MXU operands => not bit-exact).
    ref_loss, ref_probs = reference_forward(feat_idx, cls_idx, params)
    assert jnp.allclose(probs, ref_probs, atol=1e-2), float(jnp.max(jnp.abs(probs - ref_probs)))
    assert jnp.abs(loss - ref_loss) <= 0.1 * jnp.abs(ref_loss) + 1e-3, (float(loss), float(ref_loss))

    print("KERNEL_OK")
</pallas_src>

<mosaic_0001>
module attributes {stable_mosaic.version = 11 : i64} {
  func.func @_mlp_focal_kernel(%arg0: i32, %arg1: memref<64x1xi32, #tpu.memory_space<vmem>>, %arg2: memref<64x1xi32, #tpu.memory_space<vmem>>, %arg3: memref<64x128xbf16, #tpu.memory_space<vmem>>, %arg4: memref<8x128xf32, #tpu.memory_space<vmem>>, %arg5: memref<64x1xf32, #tpu.memory_space<vmem>>, %arg6: memref<64x1xf32, #tpu.memory_space<vmem>>) attributes {dimension_semantics = [#tpu.dimension_semantics<parallel>], iteration_bounds = array<i64: 4>, scalar_prefetch = 0 : i64, scratch_operands = 0 : i64, tpu.core_type = #tpu.core_type<tc>, window_params = [{transform_indices = @transform_0, window_bounds = array<i64: 64, 1>}, {transform_indices = @transform_1, window_bounds = array<i64: 64, 1>}, {pipeline_mode = #tpu.pipeline_mode<synchronous>, transform_indices = @transform_2, window_bounds = array<i64: 64, 128>}, {pipeline_mode = #tpu.pipeline_mode<synchronous>, transform_indices = @transform_3, window_bounds = array<i64: 8, 128>}, {transform_indices = @transform_4, window_bounds = array<i64: 64, 1>}, {transform_indices = @transform_5, window_bounds = array<i64: 64, 1>}]} {
    %c0 = arith.constant 0 : index
    %c0_0 = arith.constant 0 : index
    %0 = vector.load %arg1[%c0, %c0_0] : memref<64x1xi32, #tpu.memory_space<vmem>>, vector<64x1xi32>
    %1 = tpu.iota {dimensions = array<i32: 1>} : vector<64x21xi32>
    %2 = vector.broadcast %0 : vector<64x1xi32> to vector<64x21xi32>
    %3 = arith.cmpi eq, %1, %2 : vector<64x21xi32>
    %4 = arith.extui %3 : vector<64x21xi1> to vector<64x21xi32>
    %5 = arith.sitofp %4 : vector<64x21xi32> to vector<64x21xf32>
    %6 = arith.truncf %5 : vector<64x21xf32> to vector<64x21xbf16>
    %c0_1 = arith.constant 0 : index
    %c0_2 = arith.constant 0 : index
    %7 = vector.load %arg3[%c0_1, %c0_2] : memref<64x128xbf16, #tpu.memory_space<vmem>>, vector<21x21xbf16>
    %c0_3 = arith.constant 0 : index
    %c0_4 = arith.constant 0 : index
    %8 = vector.load %arg4[%c0_3, %c0_4] : memref<8x128xf32, #tpu.memory_space<vmem>>, vector<1x21xf32>
    %cst = arith.constant dense<0.000000e+00> : vector<64x21xf32>
    %9 = tpu.matmul %6, %7, %cst {dimension_numbers = #tpu.dot_dimension_numbers<[1], [0], [0], [1], [0, 0, 1, 1], [], []>} : vector<64x21xbf16>, vector<21x21xbf16>, vector<64x21xf32> -> vector<64x21xf32>
    %10 = vector.broadcast %8 : vector<1x21xf32> to vector<64x21xf32>
    %11 = arith.addf %9, %10 : vector<64x21xf32>
    %cst_5 = arith.constant 0.000000e+00 : f32
    %12 = vector.broadcast %cst_5 : f32 to vector<64x21xf32>
    %13 = arith.maximumf %11, %12 : vector<64x21xf32>
    %c32 = arith.constant 32 : index
    %c0_6 = arith.constant 0 : index
    %14 = vector.load %arg3[%c32, %c0_6] : memref<64x128xbf16, #tpu.memory_space<vmem>>, vector<21x10xbf16>
    %c1 = arith.constant 1 : index
    %c0_7 = arith.constant 0 : index
    %15 = vector.load %arg4[%c1, %c0_7] : memref<8x128xf32, #tpu.memory_space<vmem>>, vector<1x10xf32>
    %16 = arith.truncf %13 : vector<64x21xf32> to vector<64x21xbf16>
    %cst_8 = arith.constant dense<0.000000e+00> : vector<64x10xf32>
    %17 = tpu.matmul %16, %14, %cst_8 {dimension_numbers = #tpu.dot_dimension_numbers<[1], [0], [0], [1], [0, 0, 1, 1], [], []>} : vector<64x21xbf16>, vector<21x10xbf16>, vector<64x10xf32> -> vector<64x10xf32>
    %18 = vector.broadcast %15 : vector<1x10xf32> to vector<64x10xf32>
    %19 = arith.addf %17, %18 : vector<64x10xf32>
    %cst_9 = arith.constant 0.000000e+00 : f32
    %20 = vector.broadcast %cst_9 : f32 to vector<64x10xf32>
    %21 = arith.maximumf %19, %20 : vector<64x10xf32>
    %c2 = arith.constant 2 : index
    %c0_10 = arith.constant 0 : index
    %22 = vector.load %arg4[%c2, %c0_10] : memref<8x128xf32, #tpu.memory_space<vmem>>, vector<1x10xf32>
    %c3 = arith.constant 3 : index
    %c0_11 = arith.constant 0 : index
    %23 = vector.load %arg4[%c3, %c0_11] : memref<8x128xf32, #tpu.memory_space<vmem>>, vector<1x1xf32>
    %24 = vector.broadcast %22 : vector<1x10xf32> to vector<64x10xf32>
    %25 = arith.mulf %21, %24 : vector<64x10xf32>
    %cst_12 = arith.constant dense<0.000000e+00> : vector<64xf32>
    %26 = vector.multi_reduction <add>, %25, %cst_12 [1] : vector<64x10xf32> to vector<64xf32>
    %27 = vector.shape_cast %26 : vector<64xf32> to vector<64x1xf32>
    %28 = vector.broadcast %23 : vector<1x1xf32> to vector<64x1xf32>
    %29 = arith.addf %27, %28 : vector<64x1xf32>
    %cst_13 = arith.constant 0.000000e+00 : f32
    %30 = vector.broadcast %cst_13 : f32 to vector<64x1xf32>
    %31 = arith.subf %30, %29 : vector<64x1xf32>
    %32 = math.exp %31 : vector<64x1xf32>
    %cst_14 = arith.constant 1.000000e+00 : f32
    %33 = vector.broadcast %cst_14 : f32 to vector<64x1xf32>
    %34 = arith.addf %33, %32 : vector<64x1xf32>
    %35 = tpu.reciprocal %34 : vector<64x1xf32> -> vector<64x1xf32>
    %cst_15 = arith.constant 0.000000e+00 : f32
    %cst_16 = arith.constant 1.000000e+00 : f32
    %36 = vector.broadcast %cst_15 : f32 to vector<64x1xf32>
    %37 = arith.maximumf %36, %35 : vector<64x1xf32>
    %38 = vector.broadcast %cst_16 : f32 to vector<64x1xf32>
    %39 = arith.minimumf %38, %37 : vector<64x1xf32>
    %c0_17 = arith.constant 0 : index
    %c0_18 = arith.constant 0 : index
    %40 = vector.load %arg5[%c0_17, %c0_18] : memref<64x1xf32, #tpu.memory_space<vmem>>, vector<64x1xf32>
    tpu.vector_store %arg5[%c0_17, %c0_18], %39 {strides = array<i32>} : memref<64x1xf32, #tpu.memory_space<vmem>>, vector<64x1xf32>,
    %c0_19 = arith.constant 0 : index
    %c0_20 = arith.constant 0 : index
    %41 = vector.load %arg2[%c0_19, %c0_20] : memref<64x1xi32, #tpu.memory_space<vmem>>, vector<64x1xi32>
    %c1_i32 = arith.constant 1 : i32
    %42 = vector.broadcast %c1_i32 : i32 to vector<64x1xi32>
    %43 = arith.cmpi eq, %41, %42 : vector<64x1xi32>
    %cst_21 = arith.constant 1.000000e+00 : f32
    %44 = vector.broadcast %cst_21 : f32 to vector<64x1xf32>
    %45 = arith.subf %44, %39 : vector<64x1xf32>
    %46 = arith.select %43, %39, %45 : vector<64x1xi1>, vector<64x1xf32>
    %47 = math.log %46 : vector<64x1xf32>
    %cst_22 = arith.constant -1.000000e+02 : f32
    %48 = vector.broadcast %cst_22 : f32 to vector<64x1xf32>
    %49 = arith.maximumf %47, %48 : vector<64x1xf32>
    %cst_23 = arith.constant 0.000000e+00 : f32
    %50 = vector.broadcast %cst_23 : f32 to vector<64x1xf32>
    %51 = arith.subf %50, %49 : vector<64x1xf32>
    %cst_24 = arith.constant 1.000000e+00 : f32
    %52 = vector.broadcast %cst_24 : f32 to vector<64x1xf32>
    %53 = arith.subf %52, %46 : vector<64x1xf32>
    %54 = arith.mulf %53, %53 : vector<64x1xf32>
    %55 = arith.mulf %54, %54 : vector<64x1xf32>
    %56 = arith.mulf %55, %53 : vector<64x1xf32>
    %57 = arith.mulf %56, %51 : vector<64x1xf32>
    %c64_i32 = arith.constant 64 : i32
    %58 = arith.muli %arg0, %c64_i32 : i32
    %59 = tpu.iota {dimensions = array<i32: 0>} : vector<64x1xi32>
    %60 = vector.broadcast %58 : i32 to vector<64x1xi32>
    %61 = arith.addi %60, %59 : vector<64x1xi32>
    %c200_i32 = arith.constant 200 : i32
    %62 = vector.broadcast %c200_i32 : i32 to vector<64x1xi32>
    %63 = arith.cmpi slt, %61, %62 : vector<64x1xi32>
    %cst_25 = arith.constant 0.000000e+00 : f32
    %64 = vector.broadcast %cst_25 : f32 to vector<64x1xf32>
    %65 = arith.select %63, %57, %64 : vector<64x1xi1>, vector<64x1xf32>
    %c0_26 = arith.constant 0 : index
    %c0_27 = arith.constant 0 : index
    %66 = vector.load %arg6[%c0_26, %c0_27] : memref<64x1xf32, #tpu.memory_space<vmem>>, vector<64x1xf32>
    tpu.vector_store %arg6[%c0_26, %c0_27], %65 {strides = array<i32>} : memref<64x1xf32, #tpu.memory_space<vmem>>, vector<64x1xf32>,
    return
  }
  func.func @transform_0(%arg0: i32) -> (i32, i32) {
    %c0_i32 = arith.constant 0 : i32
    %c0_i32_0 = arith.constant 0 : i32
    return %arg0, %c0_i32 : i32, i32
  }
  func.func @transform_1(%arg0: i32) -> (i32, i32) {
    %c0_i32 = arith.constant 0 : i32
    %c0_i32_0 = arith.constant 0 : i32
    return %arg0, %c0_i32 : i32, i32
  }
  func.func @transform_2(%arg0: i32) -> (i32, i32) {
    %c0_i32 = arith.constant 0 : i32
    %c0_i32_0 = arith.constant 0 : i32
    %c0_i32_1 = arith.constant 0 : i32
    return %c0_i32, %c0_i32_0 : i32, i32
  }
  func.func @transform_3(%arg0: i32) -> (i32, i32) {
    %c0_i32 = arith.constant 0 : i32
    %c0_i32_0 = arith.constant 0 : i32
    %c0_i32_1 = arith.constant 0 : i32
    return %c0_i32, %c0_i32_0 : i32, i32
  }
  func.func @transform_4(%arg0: i32) -> (i32, i32) {
    %c0_i32 = arith.constant 0 : i32
    %c0_i32_0 = arith.constant 0 : i32
    return %arg0, %c0_i32 : i32, i32
  }
  func.func @transform_5(%arg0: i32) -> (i32, i32) {
    %c0_i32 = arith.constant 0 : i32
    %c0_i32_0 = arith.constant 0 : i32
    return %arg0, %c0_i32 : i32, i32
  }
}

</mosaic_0001>

<bundles_post_ra>
// kernel: mlp_forward.1
= control target key start
LH: loop header
LB: loop body
LE: loop exit
PB: predicated region body
PF: predicated region fallthrough
CT: control target
= control target key end

     0   :  { %s1084_s18 = smov 0   ;;  %s1338_s0 = inlined_call_operand.vmem [shape: s32[256,1], index: 0, kind: input, shape index: {}]   ;;  %s1339_s1 = inlined_call_operand.vmem [shape: s32[256,1], index: 1, kind: input, shape index: {}]   ;;  %s1340_s2 = inlined_call_operand.vmem [shape: bf16[64,128], index: 2, kind: input, shape index: {}]   ;;  %s1341_s3 = inlined_call_operand.vmem [shape: f32[8,128], index: 3, kind: input, shape index: {}]   ;;  %s1342_s4 = inlined_call_operand.vmem [shape: f32[256,1], index: 4, kind: output, shape index: {0}]   ;;  %s1343_s5 = inlined_call_operand.vmem [shape: f32[256,1], index: 5, kind: output, shape index: {1}]  }
   0x1 LB: > { %s931_s19 = sadd.s32 4294967295, %s1049_s18   ;;  %p935_p0 = scmp.ge.s32.totalorder %s1049_s18, 1  ;;  %s1049_s18 = sphi %s1084_s18, %s16_s18  }
   0x2   : > { %p202_p1 = scmp.lt.s32.totalorder %s1049_s18, 5 }
   0x4   : > { %p203_p2 = pnand %p935_p0, %p202_p1 }
   0x5   : > { %s936_s20 = sshll.u32 (!%p203_p2), %s931_s19, 3  ;;  %s968_s22 = sshll.u32 (!%p203_p2), %s931_s19, 6 }
   0x6   : > { %206 = sbr.rel (%p203_p2) target bundleno = 649 (0x289), region = 36  ;;  %p241_p3 = scmp.lt.s32.totalorder (!%p203_p2), %s936_s20, 31 }
   0xb   : > { %v1051_v0 = vmov 0   ;;  %s1353_s20 = smov (!%p241_p3, %s936_s20), 31  ;;  %v329_v9 = vld [vmem:[%s1340_s2 + $0x8] sm:$0x7]  ;;  %vm354_vm0 = vcmask 1041408   ;;  %vm355_vm1 = vcmask 1042432   ;;  %v273_v17 = vlaneseq }
   0xc   : > { %989 = vset.pattern.permute.xlu1 %v1051_v0  ;;  %988 = vset.pattern.permute.xlu0 %v1051_v0  ;;  %s1094_s21 = sshll.u32 %s1353_s20, 3  ;;  %v337_v10 = vunpack.c.l.b16 %v329_v9  ;;  %v1052_v12 = vmov 65535   ;;  %v971_v16 = vld [vmem:[%s1340_s2] sm:$0xff]  ;;  %vm341_vm6 = vcmask 171008   ;;  %v1053_v24 = vmov 0.0   ;;  %v972_v44 = vld [vmem:[%s1340_s2 + $0x10] sm:$0xff] }
   0xd   : > { %990 = vset.pattern.permute.xlu2 %v1051_v0  ;;  %s244_s24 = scalar_lea.vmem %s1338_s0, %s1094_s21  ;;  %v356_v13 = vsel %vm354_vm0, 4294967295, %v1052_v12  ;;  %v274_v20 = vand.u32 127, %v273_v17  ;;  %v400_v40 = vld [vmem:[%s1340_s2 + $0x18] sm:$0x7]  ;;  %v991_v46 = vld [vmem:[%s1341_s3] ss:$0 sm:$0xff]  ;;  %s1155_s20 = scalar_lea.vmem %s1339_s1, %s1094_s21 }
   0xe   : > { %v269_v1 = vld [vmem:[%s244_s24 + $0x20] sm:$0xff]  ;;  %v271_v3 = vld [vmem:[%s244_s24 + $0x30] sm:$0xff]  ;;  %v270_v4 = vld [vmem:[%s244_s24 + $0x28] sm:$0xff]  ;;  %v339_v11 = vpack.c.b16 %v337_v10, %v337_v10  ;;  %v357_v14 = vsel %vm355_vm1, %v356_v13, 0  ;;  %v412_v41 = vunpack.c.l.b16 %v400_v40  ;;  %vm479_vm11 = vcmask 80896   ;;  %s1269_s27 = scalar_lea.vmem %s1343_s5, %s1094_s21 }
   0xf   : > { %v265_v2 = vld [vmem:[%s244_s24] sm:$0xff]  ;;  %288 = vperm.xlu0 %988, %v269_v1   ;;  %294 = vperm.xlu2 %990, %v271_v3   ;;  %v266_v5 = vld [vmem:[%s244_s24 + $0x8] sm:$0xff]  ;;  %v272_v6 = vld [vmem:[%s244_s24 + $0x38] sm:$0xff]  ;;  %vm673_vm13 = vcmask 7168  }
  0x10   : > { %276 = vperm.xlu1 %989, %v265_v2   ;;  %v267_v7 = vld [vmem:[%s244_s24 + $0x10] sm:$0xff]  ;;  %v268_v8 = vld [vmem:[%s244_s24 + $0x18] sm:$0xff]  ;;  %v359_v15 = vand.u32 %v357_v14, %v339_v11  ;;  %v414_v42 = vpack.c.b16 %v412_v41, %v412_v41  ;;  %v992_v10 = vld [vmem:[%s1341_s3 + $0x1] ss:$0 sm:$0xff]  ;;  %s1192_s24 = scalar_lea.vmem %s1342_s4, %s1094_s21 }
  0x11   : > { %v993_v13 = vld [vmem:[%s1341_s3 + $0x2] ss:$0 sm:$0xff] }
  0x12   : > { %367 = vmatpush.bf16.msra.mxu0 %v359_v15  ;;  %973 = vmatpush.bf16.msra.mxu2 %v359_v15  ;;  %v429_v43 = vand.u32 %v414_v42, %v357_v14 }
  0x14   : > { %437 = vmatpush.bf16.msra.mxu1 %v429_v43  ;;  %975 = vmatpush.bf16.msra.mxu3 %v429_v43 }
  0x16   : > { %368 = vmatpush.bf16.msra.mxu0 %v971_v16  ;;  %974 = vmatpush.bf16.msra.mxu2 %v971_v16 }
  0x17   : > { %291 = vperm.xlu0 %988, %v270_v4   ;;  %297 = vperm.xlu2 %990, %v272_v6  }
  0x18   : > { %279 = vperm.xlu1 %989, %v266_v5   ;;  %438 = vmatpush.bf16.msra.mxu1 %v972_v44 }
  0x19   : > { %976 = vmatpush.bf16.msra.mxu3 %v972_v44 }
  0x1f   : > { %282 = vperm.xlu0 %988, %v267_v7  }
  0x20   : > { %285 = vperm.xlu1 %989, %v268_v8  }
  0x69   : > { %v295_v21 = vpop.permute.xlu2 %294 }
  0x6a   : > { %vm305_vm7 = vcmp.eq.s32.totalorder %v274_v20, %v295_v21 }
  0x6b   : > { %v950_v34 = vsel %vm305_vm7, 1.0, %v1053_v24 }
  0x71   : > { %v298_v31 = vpop.permute.xlu2 %297 }
  0x72   : > { %vm306_vm8 = vcmp.eq.s32.totalorder %v274_v20, %v298_v31 }
  0x73   : > { %v951_v35 = vsel %vm306_vm8, 1.0, %v1053_v24 }
  0x74   : > { %v326_v38 = vpack.c.bf16 %v951_v35, %v950_v34 }
  0x81   : > { %v289_v18 = vpop.permute.xlu0 %288 }
  0x82   : > { %v277_v19 = vpop.permute.xlu1 %276  ;;  %vm303_vm2 = vcmp.eq.s32.totalorder %v274_v20, %v289_v18 }
  0x83   : > { %vm299_vm3 = vcmp.eq.s32.totalorder %v274_v20, %v277_v19  ;;  %v948_v25 = vsel %vm303_vm2, 1.0, %v1053_v24 }
  0x84   : > { %v944_v26 = vsel %vm299_vm3, 1.0, %v1053_v24 }
  0x89   : > { %v292_v22 = vpop.permute.xlu0 %291 }
  0x8a   : > { %v280_v23 = vpop.permute.xlu1 %279  ;;  %vm304_vm4 = vcmp.eq.s32.totalorder %v274_v20, %v292_v22 }
  0x8b   : > { %vm300_vm5 = vcmp.eq.s32.totalorder %v274_v20, %v280_v23  ;;  %v949_v27 = vsel %vm304_vm4, 1.0, %v1053_v24 }
  0x8c   : > { %v945_v28 = vsel %vm300_vm5, 1.0, %v1053_v24  ;;  %v325_v29 = vpack.c.bf16 %v949_v27, %v948_v25 }
  0x8d   : > { %v323_v30 = vpack.c.bf16 %v945_v28, %v944_v26 }
  0x8e   : > { %958 = vmatmul.msk.bf16.vlgmr.msra.gmra.mxu2 %vm341_vm6, %v325_v29 }
  0x8f   : > { %956 = vmatmul.msk.bf16.vlgmr.msra.gmra.mxu0 %vm341_vm6, %v323_v30 }
  0x91   : > { %v283_v32 = vpop.permute.xlu0 %282 }
  0x92   : > { %v286_v33 = vpop.permute.xlu1 %285  ;;  %vm301_vm9 = vcmp.eq.s32.totalorder %v274_v20, %v283_v32 }
  0x93   : > { %vm302_vm10 = vcmp.eq.s32.totalorder %v274_v20, %v286_v33  ;;  %v946_v36 = vsel %vm301_vm9, 1.0, %v1053_v24 }
  0x94   : > { %v947_v37 = vsel %vm302_vm10, 1.0, %v1053_v24 }
  0x95   : > { %v324_v39 = vpack.c.bf16 %v947_v37, %v946_v36 }
  0x9e   : > { %959 = vmatmul.msk.bf16.gmra.mxu2 %vm341_vm6, %v326_v38 }
  0x9f   : > { %957 = vmatmul.msk.bf16.gmra.mxu0 %vm341_vm6, %v324_v39 }
 0x10c   : > { %v370_v45 = vpop.f32.mrf.mxu0 }
 0x10d   : > { %v371_v48 = vadd.f32 %v991_v46, %v370_v45 }
 0x10f   : > { %v390_v51 = vmax.f32 %v371_v48, 0.0 }
 0x111   : > { %v380_v47 = vpop.f32.mrf.mxu2 }
 0x112   : > { %v381_v53 = vadd.f32 %v991_v46, %v380_v47 }
 0x114   : > { %v372_v49 = vpop.f32.mrf.mxu0  ;;  %v394_v58 = vmax.f32 %v381_v53, 0.0  ;;  %v1141_v53 = vld [vmem:[%s1341_s3 + $0x3] ss:$0 sm:$0xff] }
 0x115   : > { %v373_v50 = vadd.f32 %v991_v46, %v372_v49 }
 0x117   : > { %v391_v52 = vmax.f32 %v373_v50, 0.0 }
 0x119   : > { %v402_v54 = vpack.c.bf16 %v391_v52, %v390_v51  ;;  %v382_v55 = vpop.f32.mrf.mxu2 }
 0x11a   : > { %v383_v56 = vadd.f32 %v991_v46, %v382_v55 }
 0x11b   : > { %964 = vmatmul.msk.bf16.vlgmr.msra.gmra.mxu1 %vm341_vm6, %v402_v54 }
 0x11c   : > { %v375_v57 = vpop.f32.mrf.mxu0  ;;  %v395_v59 = vmax.f32 %v383_v56, 0.0 }
 0x11d   : > { %v376_v62 = vadd.f32 %v991_v46, %v375_v57 }
 0x11e   : > { %v404_v60 = vpack.c.bf16 %v395_v59, %v394_v58 }
 0x11f   : > { %v392_v1 = vmax.f32 %v376_v62, 0.0 }
 0x120   : > { %966 = vmatmul.msk.bf16.vlgmr.msra.gmra.mxu3 %vm341_vm6, %v404_v60 }
 0x121   : > { %v385_v61 = vpop.f32.mrf.mxu2 }
 0x122   : > { %v386_v3 = vadd.f32 %v991_v46, %v385_v61 }
 0x124   : > { %v377_v63 = vpop.f32.mrf.mxu0  ;;  %v396_v7 = vmax.f32 %v386_v3, 0.0 }
 0x125   : > { %v378_v0 = vadd.f32 %v991_v46, %v377_v63 }
 0x127   : > { %v393_v2 = vmax.f32 %v378_v0, 0.0 }
 0x129   : > { %v403_v4 = vpack.c.bf16 %v393_v2, %v392_v1  ;;  %v387_v5 = vpop.f32.mrf.mxu2 }
 0x12a   : > { %v388_v6 = vadd.f32 %v991_v46, %v387_v5 }
 0x12b   : > { %965 = vmatmul.msk.bf16.gmra.mxu1 %vm341_vm6, %v403_v4 }
 0x12c   : > { %v397_v8 = vmax.f32 %v388_v6, 0.0 }
 0x12e   : > { %v405_v9 = vpack.c.bf16 %v397_v8, %v396_v7 }
 0x130   : > { %967 = vmatmul.msk.bf16.gmra.mxu3 %vm341_vm6, %v405_v9 }
 0x198   : > { %v440_v11 = vpop.f32.mrf.mxu1 }
 0x199   : > { %v441_v12 = vadd.f32 %v992_v10, %v440_v11 }
 0x19b   : > { %v460_v14 = vmax.f32 %v441_v12, 0.0 }
 0x19d   : > { %v471_v15 = vmul.f32 %v993_v13, %v460_v14 }
 0x19f   : > { %v480_v16 = vsel %vm479_vm11, %v471_v15, 0.0 }
 0x1a0   : > { %v442_v18 = vpop.f32.mrf.mxu1  ;;  %481 = vadd.xlane.f32.xlu2 %v480_v16 }
 0x1a1   : > { %v443_v19 = vadd.f32 %v992_v10, %v442_v18 }
 0x1a3   : > { %v461_v20 = vmax.f32 %v443_v19, 0.0  ;;  %v450_v21 = vpop.f32.mrf.mxu3 }
 0x1a4   : > { %v451_v22 = vadd.f32 %v992_v10, %v450_v21 }
 0x1a5   : > { %v472_v23 = vmul.f32 %v993_v13, %v461_v20  ;;  %v1160_v20 = vshrl.u32 %v273_v17, 7 }
 0x1a6   : > { %v464_v24 = vmax.f32 %v451_v22, 0.0 }
 0x1a7   : > { %v483_v25 = vsel %vm479_vm11, %v472_v23, 0.0  ;;  %v789_v17 = vadd.s32 8, %v1160_v20 }
 0x1a8   : > { %484 = vadd.xlane.f32.xlu0 %v483_v25  ;;  %v445_v26 = vpop.f32.mrf.mxu1  ;;  %v475_v28 = vmul.f32 %v993_v13, %v464_v24  ;;  %v682_v25 = vld [vmem:[%s1155_s20] sm:$0xff] }
 0x1a9   : > { %v446_v27 = vadd.f32 %v992_v10, %v445_v26  ;;  %v1165_v26 = vstv %s968_s22  ;;  %vm690_vm0 = vcmp.eq.s32.totalorder %v682_v25, 1 }
 0x1aa   : > { %v492_v30 = vsel %vm479_vm11, %v475_v28, 0.0 }
 0x1ab   : > { %v462_v29 = vmax.f32 %v446_v27, 0.0  ;;  %v452_v31 = vpop.f32.mrf.mxu3  ;;  %493 = vadd.xlane.f32.xlu2 %v492_v30 }
 0x1ac   : > { %v453_v32 = vadd.f32 %v992_v10, %v452_v31 }
 0x1ad   : > { %v473_v33 = vmul.f32 %v993_v13, %v462_v29 }
 0x1ae   : > { %v465_v34 = vmax.f32 %v453_v32, 0.0 }
 0x1af   : > { %v486_v35 = vsel %vm479_vm11, %v473_v33, 0.0 }
 0x1b0   : > { %v447_v36 = vpop.f32.mrf.mxu1  ;;  %487 = vadd.xlane.f32.xlu1 %v486_v35  ;;  %v476_v38 = vmul.f32 %v993_v13, %v465_v34 }
 0x1b1   : > { %v448_v37 = vadd.f32 %v992_v10, %v447_v36 }
 0x1b2   : > { %v495_v40 = vsel %vm479_vm11, %v476_v38, 0.0 }
 0x1b3   : > { %v463_v39 = vmax.f32 %v448_v37, 0.0  ;;  %v455_v41 = vpop.f32.mrf.mxu3  ;;  %496 = vadd.xlane.f32.xlu0 %v495_v40  ;;  %v1177_v37 = vadd.s32 %v1165_v26, %v1160_v20 }
 0x1b4   : > { %v456_v42 = vadd.f32 %v992_v10, %v455_v41 }
 0x1b5   : > { %v474_v43 = vmul.f32 %v993_v13, %v463_v39 }
 0x1b6   : > { %v466_v44 = vmax.f32 %v456_v42, 0.0  ;;  %v1182_v42 = vld [vmem:[%s1155_s20 + $0x8] sm:$0xff] }
 0x1b7   : > { %v489_v45 = vsel %vm479_vm11, %v474_v43, 0.0  ;;  %v1185_v43 = vadd.s32 %v1165_v26, %v789_v17  ;;  %vm691_vm5 = vcmp.eq.s32.totalorder %v1182_v42, 1 }
 0x1b8   : > { %490 = vadd.xlane.f32.xlu2 %v489_v45  ;;  %v477_v46 = vmul.f32 %v993_v13, %v466_v44 }
 0x1ba   : > { %v498_v47 = vsel %vm479_vm11, %v477_v46, 0.0 }
 0x1bb   : > { %v457_v48 = vpop.f32.mrf.mxu3  ;;  %499 = vadd.xlane.f32.xlu1 %v498_v47 }
 0x1bc   : > { %v458_v49 = vadd.f32 %v992_v10, %v457_v48 }
 0x1be   : > { %v467_v50 = vmax.f32 %v458_v49, 0.0 }
 0x1c0   : > { %v478_v51 = vmul.f32 %v993_v13, %v467_v50 }
 0x1c2   : > { %v501_v52 = vsel %vm479_vm11, %v478_v51, 0.0 }
 0x1c3   : > { %502 = vadd.xlane.f32.xlu2 %v501_v52 }
 0x213   : > { %v482_v54 = vpop.xlane.xlu2 %481 }
 0x214   : > { %v505_v55 = vadd.f32 %v1141_v53, %v482_v54 }
 0x216   : > { %v513_v56 = vsub.f32 0.0, %v505_v55 }
 0x218   : > { %v521_v57 = vmul.f32 1.442695, %v513_v56 }
 0x21a   : > { %995 = vpow2.f32 %v521_v57 }
 0x21b   : > { %v485_v58 = vpop.xlane.xlu0 %484 }
 0x21c   : > { %v506_v59 = vadd.f32 %v1141_v53, %v485_v58 }
 0x21e   : > { %v514_v60 = vsub.f32 0.0, %v506_v59  ;;  %v494_v61 = vpop.xlane.xlu2 %493 }
 0x21f   : > { %v509_v0 = vadd.f32 %v1141_v53, %v494_v61 }
 0x220   : > { %v996_v62 = vpop.eup %995  ;;  %v523_v63 = vmul.f32 1.442695, %v514_v60  ;;  %v1214_v60 = vld [vmem:[%s1155_s20 + $0x20] sm:$0xff] }
 0x221   : > { %v537_v1 = vadd.f32 1.0, %v996_v62  ;;  %v517_v2 = vsub.f32 0.0, %v509_v0  ;;  %vm694_vm10 = vcmp.eq.s32.totalorder %v1214_v60, 1 }
 0x222   : > { %997 = vpow2.f32 %v523_v63  ;;  %v792_v63 = vadd.s32 32, %v1160_v20 }
 0x223   : > { %999 = vrcp.f32 %v537_v1  ;;  %v488_v3 = vpop.xlane.xlu1 %487  ;;  %v529_v4 = vmul.f32 1.442695, %v517_v2  ;;  %v556_v18 = vand.u32 2147483648, %v537_v1  ;;  %v554_v23 = vand.u32 2147483647, %v537_v1 }
 0x224   : > { %v507_v5 = vadd.f32 %v1141_v53, %v488_v3  ;;  %vm550_vm14 = vweird.f32 %v537_v1 }
 0x225   : > { %1001 = vpow2.f32 %v529_v4  ;;  %v557_v29 = vor.u32 1.1754944e-38, %v556_v18  ;;  %vm555_vm1 = vcmp.eq.f32.partialorder %v554_v23, 8.507059e+37 }
 0x226   : > { %v515_v6 = vsub.f32 0.0, %v507_v5  ;;  %v497_v7 = vpop.xlane.xlu0 %496 }
 0x227   : > { %v510_v10 = vadd.f32 %v1141_v53, %v497_v7 }
 0x228   : > { %v998_v8 = vpop.eup %997  ;;  %v525_v9 = vmul.f32 1.442695, %v515_v6 }
 0x229   : > { %v1000_v11 = vpop.eup %999  ;;  %v1148_v12 = vadd.f32 1.0, %v998_v8  ;;  %v518_v14 = vsub.f32 0.0, %v510_v10 }
 0x22a   : > { %v546_v13 = vmul.f32 %v1000_v11, %v537_v1  ;;  %1003 = vpow2.f32 %v525_v9  ;;  %vm551_vm12 = vweird.f32 %v1000_v11 }
 0x22b   : > { %1005 = vrcp.f32 %v1148_v12  ;;  %v1002_v15 = vpop.eup %1001  ;;  %v531_v19 = vmul.f32 1.442695, %v518_v14  ;;  %v491_v24 = vpop.xlane.xlu2 %490  ;;  %vm552_vm15 = vmor %vm550_vm14, %vm551_vm12  ;;  %v568_v31 = vand.u32 2147483647, %v1148_v12  ;;  %v570_v32 = vand.u32 2147483648, %v1148_v12 }
 0x22c   : > { %v547_v16 = vsub.f32 1.0, %v546_v13  ;;  %v1162_v21 = vadd.f32 1.0, %v1002_v15  ;;  %v508_v34 = vadd.f32 %v1141_v53, %v491_v24  ;;  %vm564_vm2 = vweird.f32 %v1148_v12 }
 0x22d   : > { %1007 = vpow2.f32 %v531_v19  ;;  %vm1194_vm3 = vcmp.eq.f32.partialorder %v568_v31, 8.507059e+37  ;;  %v571_v48 = vor.u32 1.1754944e-38, %v570_v32  ;;  %v1231_v15 = vadd.s32 %v1165_v26, %v792_v63 }
 0x22e   : > { %v548_v22 = vmul.f32 %v1000_v11, %v547_v16  ;;  %1009 = vrcp.f32 %v1162_v21  ;;  %v610_v39 = vand.u32 2147483647, %v1162_v21  ;;  %v500_v45 = vpop.xlane.xlu1 %499  ;;  %v516_v50 = vsub.f32 0.0, %v508_v34 }
 0x22f   : > { %vm606_vm6 = vweird.f32 %v1162_v21  ;;  %v612_v56 = vand.u32 2147483648, %v1162_v21  ;;  %v1209_v57 = vadd.f32 %v1141_v53, %v500_v45 }
 0x230   : > { %v1004_v27 = vpop.eup %1003  ;;  %v549_v28 = vadd.f32 %v1000_v11, %v548_v22  ;;  %vm1203_vm7 = vcmp.eq.f32.partialorder %v610_v39, 8.507059e+37  ;;  %v527_v1 = vmul.f32 1.442695, %v516_v50 }
 0x231   : > { %v1006_v30 = vpop.eup %1005  ;;  %v1171_v33 = vadd.f32 1.0, %v1004_v27 }
 0x232   : > { %v553_v35 = vsel %vm552_vm15, %v1000_v11, %v549_v28  ;;  %v560_v36 = vmul.f32 %v1006_v30, %v1148_v12  ;;  %vm565_vm4 = vweird.f32 %v1006_v30  ;;  %v613_v11 = vor.u32 1.1754944e-38, %v612_v56  ;;  %v1228_v12 = vld [vmem:[%s1155_s20 + $0x10] sm:$0xff] }
 0x233   : > { %v558_v38 = vsel %vm555_vm1, %v557_v29, %v553_v35  ;;  %1011 = vrcp.f32 %v1171_v33  ;;  %v1008_v40 = vpop.eup %1007  ;;  %vm566_vm8 = vmor %vm564_vm2, %vm565_vm4  ;;  %v582_v0 = vand.u32 2147483647, %v1171_v33  ;;  %v584_v8 = vand.u32 2147483648, %v1171_v33 }
 0x234   : > { %v657_v41 = vmax.f32 %v558_v38, 0.0  ;;  %v561_v44 = vsub.f32 1.0, %v560_v36  ;;  %v1010_v46 = vpop.eup %1009  ;;  %v1198_v49 = vadd.f32 1.0, %v1008_v40  ;;  %vm578_vm12 = vweird.f32 %v1171_v33 }
 0x235   : > { %v602_v54 = vmul.f32 %v1010_v46, %v1162_v21  ;;  %vm607_vm9 = vweird.f32 %v1010_v46  ;;  %vm805_vm15 = vcmp.lt.s32.totalorder %v1177_v37, 200  ;;  %vm1241_vm1 = vcmp.eq.f32.partialorder %v582_v0, 8.507059e+37 }
 0x236   : > { %v665_v51 = vmin.f32 %v657_v41, 1.0  ;;  %v562_v52 = vmul.f32 %v1006_v30, %v561_v44  ;;  %1013 = vrcp.f32 %v1198_v49  ;;  %vm608_vm11 = vmor %vm606_vm6, %vm607_vm9  ;;  %v585_v21 = vor.u32 1.1754944e-38, %v584_v8 }
 0x237   : > { %v603_v61 = vsub.f32 1.0, %v602_v54  ;;  %v624_v17 = vand.u32 2147483647, %v1198_v49  ;;  %v626_v34 = vand.u32 2147483648, %v1198_v49  ;;  %vm620_vm4 = vweird.f32 %v1198_v49 }
 0x238   : > { %674 = vst.msk [vmem:[%s1192_s24] sm:$0xff] %vm673_vm13, %v665_v51  ;;  %v698_v58 = vsub.f32 1.0, %v665_v51  ;;  %v563_v59 = vadd.f32 %v1006_v30, %v562_v52  ;;  %v790_v0 = vadd.s32 16, %v1160_v20 }
 0x239   : > { %v1012_v62 = vpop.eup %1011  ;;  %v604_v4 = vmul.f32 %v1010_v46, %v603_v61  ;;  %v627_v50 = vor.u32 1.1754944e-38, %v626_v34  ;;  %vm625_vm6 = vcmp.eq.f32.partialorder %v624_v17, 8.507059e+37 }
 0x23a   : > { %v706_v2 = vsel %vm690_vm0, %v665_v51, %v698_v58  ;;  %v567_v3 = vsel %vm566_vm8, %v1006_v30, %v563_v59  ;;  %v574_v5 = vmul.f32 %v1012_v62, %v1171_v33  ;;  %vm579_vm14 = vweird.f32 %v1012_v62 }
 0x23b   : > { %1015 = vlog2.f32 %v706_v2  ;;  %v746_v6 = vsub.f32 1.0, %v706_v2  ;;  %v572_v7 = vsel %vm1194_vm3, %v571_v48, %v567_v3  ;;  %v605_v10 = vadd.f32 %v1010_v46, %v604_v4  ;;  %vm580_vm2 = vmor %vm578_vm12, %vm579_vm14 }
 0x23c   : > { %v658_v9 = vmax.f32 %v572_v7, 0.0  ;;  %v575_v13 = vsub.f32 1.0, %v574_v5  ;;  %v1014_v16 = vpop.eup %1013  ;;  %1017 = vpow2.f32 %v527_v1  ;;  %vm692_vm0 = vcmp.eq.s32.totalorder %v1228_v12, 1  ;;  %v687_v1 = vld [vmem:[%s1155_s20 + $0x28] sm:$0xff] }
 0x23d   : > { %v754_v14 = vmul.f32 %v746_v6, %v746_v6  ;;  %v609_v19 = vsel %vm608_vm11, %v1010_v46, %v605_v10  ;;  %v616_v25 = vmul.f32 %v1014_v16, %v1198_v49  ;;  %vm621_vm3 = vweird.f32 %v1014_v16 }
 0x23e   : > { %v666_v18 = vmin.f32 %v658_v9, 1.0  ;;  %v576_v22 = vmul.f32 %v1012_v62, %v575_v13  ;;  %v614_v23 = vsel %vm1203_vm7, %v613_v11, %v609_v19  ;;  %v519_v3 = vsub.f32 0.0, %v1209_v57  ;;  %v503_v57 = vpop.xlane.xlu2 %502 }
 0x23f   : > { %v661_v28 = vmax.f32 %v614_v23, 0.0  ;;  %v762_v31 = vmul.f32 %v754_v14, %v754_v14  ;;  %v617_v32 = vsub.f32 1.0, %v616_v25  ;;  %vm806_vm7 = vcmp.lt.s32.totalorder %v1185_v43, 200 }
 0x240   : > { %675 = vst.msk [vmem:[%s1192_s24 + $0x8] sm:$0xff] %vm673_vm13, %v666_v18  ;;  %v699_v27 = vsub.f32 1.0, %v666_v18  ;;  %v577_v29 = vadd.f32 %v1012_v62, %v576_v22  ;;  %vm809_vm8 = vcmp.lt.s32.totalorder %v1231_v15, 200  ;;  %vm695_vm9 = vcmp.eq.s32.totalorder %v687_v1, 1 }
 0x241   : > { %v1016_v30 = vpop.eup %1015  ;;  %v669_v38 = vmin.f32 %v661_v28, 1.0  ;;  %v618_v44 = vmul.f32 %v1014_v16, %v617_v32  ;;  %v770_v42 = vmul.f32 %v762_v31, %v746_v6  ;;  %v799_v13 = vadd.s32 %v1165_v26, %v790_v0 }
 0x242   : > { %v715_v35 = vmul.f32 0.6931472, %v1016_v30  ;;  %v707_v36 = vsel %vm691_vm5, %v666_v18, %v699_v27  ;;  %v581_v39 = vsel %vm580_vm2, %v1012_v62, %v577_v29  ;;  %v1018_v45 = vpop.eup %1017  ;;  %vm622_vm5 = vmor %vm620_vm4, %vm621_vm3  ;;  %v533_v14 = vmul.f32 1.442695, %v519_v3 }
 0x243   : > { %1019 = vlog2.f32 %v707_v36  ;;  %v747_v40 = vsub.f32 1.0, %v707_v36  ;;  %v586_v41 = vsel %vm1241_vm1, %v585_v21, %v581_v39  ;;  %678 = vst.msk [vmem:[%s1192_s24 + $0x20] sm:$0xff] %vm673_vm13, %v669_v38  ;;  %v702_v33 = vsub.f32 1.0, %v669_v38 }
 0x244   : > { %v730_v46 = vmax.f32 %v715_v35, -100.0  ;;  %v659_v47 = vmax.f32 %v586_v41, 0.0  ;;  %v619_v48 = vadd.f32 %v1014_v16, %v618_v44  ;;  %v1260_v51 = vadd.f32 1.0, %v1018_v45 }
 0x245   : > { %v755_v54 = vmul.f32 %v747_v40, %v747_v40  ;;  %v710_v55 = vsel %vm694_vm10, %v669_v38, %v702_v33  ;;  %v512_v27 = vadd.f32 %v1141_v53, %v503_v57  ;;  %vm807_vm11 = vcmp.lt.s32.totalorder %v799_v13, 200 }
 0x246   : > { %v738_v52 = vsub.f32 0.0, %v730_v46  ;;  %v667_v56 = vmin.f32 %v659_v47, 1.0  ;;  %1021 = vlog2.f32 %v710_v55  ;;  %v750_v58 = vsub.f32 1.0, %v710_v55 }
 0x247   : > { %v623_v59 = vsel %vm622_vm5, %v1014_v16, %v619_v48  ;;  %1023 = vrcp.f32 %v1260_v51  ;;  %v763_v6 = vmul.f32 %v755_v54, %v755_v54  ;;  %v596_v25 = vand.u32 2147483647, %v1260_v51 }
 0x248   : > { %v778_v49 = vmul.f32 %v770_v42, %v738_v52  ;;  %676 = vst.msk [vmem:[%s1192_s24 + $0x10] sm:$0xff] %vm673_vm13, %v667_v56  ;;  %v700_v61 = vsub.f32 1.0, %v667_v56  ;;  %v628_v60 = vsel %vm625_vm6, %v627_v50, %v623_v59  ;;  %v758_v63 = vmul.f32 %v750_v58, %v750_v58 }
 0x249   : > { %v1020_v62 = vpop.eup %1019  ;;  %v662_v2 = vmax.f32 %v628_v60, 0.0  ;;  %v771_v19 = vmul.f32 %v763_v6, %v747_v40  ;;  %v598_v34 = vand.u32 2147483648, %v1260_v51  ;;  %v520_v41 = vsub.f32 0.0, %v512_v27 }
 0x24a   : > { %v813_v4 = vsel %vm805_vm15, %v778_v49, 0.0  ;;  %v717_v5 = vmul.f32 0.6931472, %v1020_v62  ;;  %v708_v7 = vsel %vm692_vm0, %v667_v56, %v700_v61  ;;  %v766_v11 = vmul.f32 %v758_v63, %v758_v63  ;;  %v685_v62 = vld [vmem:[%s1155_s20 + $0x18] sm:$0xff] }
 0x24b   : > { %821 = vst.msk [vmem:[%s1269_s27] sm:$0xff] %vm673_vm13, %v813_v4  ;;  %1025 = vlog2.f32 %v708_v7  ;;  %v748_v8 = vsub.f32 1.0, %v708_v7  ;;  %v670_v9 = vmin.f32 %v662_v2, 1.0  ;;  %v793_v46 = vadd.s32 40, %v1160_v20 }
 0x24c   : > { %v731_v10 = vmax.f32 %v717_v5, -100.0  ;;  %v1022_v37 = vpop.eup %1021  ;;  %v774_v31 = vmul.f32 %v766_v11, %v750_v58  ;;  %vm592_vm12 = vweird.f32 %v1260_v51  ;;  %vm1298_vm14 = vcmp.eq.f32.partialorder %v596_v25, 8.507059e+37 }
 0x24d   : > { %679 = vst.msk [vmem:[%s1192_s24 + $0x28] sm:$0xff] %vm673_vm13, %v670_v9  ;;  %v703_v12 = vsub.f32 1.0, %v670_v9  ;;  %v1024_v16 = vpop.eup %1023  ;;  %v723_v22 = vmul.f32 0.6931472, %v1022_v37  ;;  %v756_v23 = vmul.f32 %v748_v8, %v748_v8  ;;  %v535_v47 = vmul.f32 1.442695, %v520_v41 }
 0x24e   : > { %v739_v18 = vsub.f32 0.0, %v731_v10  ;;  %v588_v21 = vmul.f32 %v1024_v16, %v1260_v51  ;;  %vm593_vm10 = vweird.f32 %v1024_v16  ;;  %v599_v54 = vor.u32 1.1754944e-38, %v598_v34 }
 0x24f   : > { %v711_v24 = vsel %vm695_vm9, %v670_v9, %v703_v12  ;;  %v734_v29 = vmax.f32 %v723_v22, -100.0  ;;  %v764_v39 = vmul.f32 %v756_v23, %v756_v23  ;;  %vm594_vm15 = vmor %vm592_vm12, %vm593_vm10  ;;  %v802_v49 = vadd.s32 %v1165_v26, %v793_v46 }
 0x250   : > { %v779_v28 = vmul.f32 %v771_v19, %v739_v18  ;;  %1027 = vlog2.f32 %v711_v24  ;;  %v751_v17 = vsub.f32 1.0, %v711_v24  ;;  %v589_v32 = vsub.f32 1.0, %v588_v21 }
 0x251   : > { %v1026_v30 = vpop.eup %1025  ;;  %1029 = vpow2.f32 %v533_v14  ;;  %v742_v36 = vsub.f32 0.0, %v734_v29  ;;  %v772_v52 = vmul.f32 %v764_v39, %v748_v8  ;;  %vm810_vm0 = vcmp.lt.s32.totalorder %v802_v49, 200 }
 0x252   : > { %v814_v35 = vsel %vm806_vm7, %v779_v28, 0.0  ;;  %v719_v38 = vmul.f32 0.6931472, %v1026_v30  ;;  %v759_v40 = vmul.f32 %v751_v17, %v751_v17  ;;  %v590_v53 = vmul.f32 %v1024_v16, %v589_v32 }
 0x253   : > { %822 = vst.msk [vmem:[%s1269_s27 + $0x8] sm:$0xff] %vm673_vm13, %v814_v35  ;;  %v782_v44 = vmul.f32 %v774_v31, %v742_v36  ;;  %1031 = vpow2.f32 %v535_v47  ;;  %vm693_vm1 = vcmp.eq.s32.totalorder %v685_v62, 1  ;;  %v791_v12 = vadd.s32 24, %v1160_v20  ;;  %v688_v35 = vld [vmem:[%s1155_s20 + $0x30] sm:$0xff] }
 0x254   : > { %v732_v45 = vmax.f32 %v719_v38, -100.0  ;;  %v591_v33 = vadd.f32 %v1024_v16, %v590_v53  ;;  %v767_v51 = vmul.f32 %v759_v40, %v759_v40 }
 0x255   : > { %v817_v48 = vsel %vm809_vm8, %v782_v44, 0.0  ;;  %v800_v25 = vadd.s32 %v1165_v26, %v791_v12  ;;  %vm696_vm8 = vcmp.eq.s32.totalorder %v688_v35, 1 }
 0x256   : > { %v1028_v42 = vpop.eup %1027  ;;  %v740_v50 = vsub.f32 0.0, %v732_v45  ;;  %825 = vst.msk [vmem:[%s1269_s27 + $0x20] sm:$0xff] %vm673_vm13, %v817_v48  ;;  %v595_v58 = vsel %vm594_vm15, %v1024_v16, %v591_v33  ;;  %v775_v2 = vmul.f32 %v767_v51, %v751_v17 }
 0x257   : > { %v1030_v55 = vpop.eup %1029  ;;  %v725_v56 = vmul.f32 0.6931472, %v1028_v42  ;;  %v600_v15 = vsel %vm1298_vm14, %v599_v54, %v595_v58  ;;  %vm808_vm6 = vcmp.lt.s32.totalorder %v800_v25, 200 }
 0x258   : > { %v780_v59 = vmul.f32 %v772_v52, %v740_v50  ;;  %v543_v61 = vadd.f32 1.0, %v1030_v55  ;;  %v660_v63 = vmax.f32 %v600_v15, 0.0  ;;  %v689_v50 = vld [vmem:[%s1155_s20 + $0x38] sm:$0xff] }
 0x259   : > { %v735_v60 = vmax.f32 %v725_v56, -100.0  ;;  %v1032_v4 = vpop.eup %1031  ;;  %vm697_vm12 = vcmp.eq.s32.totalorder %v689_v50, 1  ;;  %v794_v56 = vadd.s32 48, %v1160_v20 }
 0x25a   : > { %v815_v0 = vsel %vm807_vm11, %v780_v59, 0.0  ;;  %1033 = vrcp.f32 %v543_v61  ;;  %v668_v3 = vmin.f32 %v660_v63, 1.0  ;;  %v544_v7 = vadd.f32 1.0, %v1032_v4 }
 0x25b   : > { %823 = vst.msk [vmem:[%s1269_s27 + $0x10] sm:$0xff] %vm673_vm13, %v815_v0  ;;  %v743_v1 = vsub.f32 0.0, %v735_v60  ;;  %v640_v14 = vand.u32 2147483648, %v543_v61  ;;  %v638_v18 = vand.u32 2147483647, %v543_v61  ;;  %vm634_vm3 = vweird.f32 %v543_v61 }
 0x25c   : > { %677 = vst.msk [vmem:[%s1192_s24 + $0x18] sm:$0xff] %vm673_vm13, %v668_v3  ;;  %v701_v6 = vsub.f32 1.0, %v668_v3  ;;  %v654_v38 = vand.u32 2147483648, %v544_v7  ;;  %v652_v40 = vand.u32 2147483647, %v544_v7  ;;  %vm648_vm9 = vweird.f32 %v544_v7 }
 0x25d   : > { %v783_v5 = vmul.f32 %v775_v2, %v743_v1  ;;  %v641_v27 = vor.u32 1.1754944e-38, %v640_v14  ;;  %vm639_vm5 = vcmp.eq.f32.partialorder %v638_v18, 8.507059e+37  ;;  %v803_v60 = vadd.s32 %v1165_v26, %v794_v56 }
 0x25e   : > { %v709_v9 = vsel %vm693_vm1, %v668_v3, %v701_v6  ;;  %v655_v33 = vor.u32 1.1754944e-38, %v654_v38  ;;  %vm653_vm11 = vcmp.eq.f32.partialorder %v652_v40, 8.507059e+37  ;;  %v795_v2 = vadd.s32 56, %v1160_v20 }
 0x25f   : > { %v818_v8 = vsel %vm810_vm0, %v783_v5, 0.0  ;;  %1035 = vlog2.f32 %v709_v9  ;;  %v749_v57 = vsub.f32 1.0, %v709_v9  ;;  %vm811_vm14 = vcmp.lt.s32.totalorder %v803_v60, 200 }
 0x260   : > { %v1034_v10 = vpop.eup %1033  ;;  %826 = vst.msk [vmem:[%s1269_s27 + $0x28] sm:$0xff] %vm673_vm13, %v818_v8  ;;  %1037 = vrcp.f32 %v544_v7  ;;  %v804_v8 = vadd.s32 %v1165_v26, %v795_v2 }
 0x261   : > { %v630_v37 = vmul.f32 %v1034_v10, %v543_v61  ;;  %v757_v11 = vmul.f32 %v749_v57, %v749_v57  ;;  %vm635_vm2 = vweird.f32 %v1034_v10 }
 0x262   : > { %vm636_vm4 = vmor %vm634_vm3, %vm635_vm2  ;;  %vm812_vm15 = vcmp.lt.s32.totalorder %v804_v8, 200 }
 0x263   : > { %v631_v13 = vsub.f32 1.0, %v630_v37  ;;  %v765_v24 = vmul.f32 %v757_v11, %v757_v11 }
 0x265   : > { %v632_v16 = vmul.f32 %v1034_v10, %v631_v13  ;;  %v1036_v19 = vpop.eup %1035  ;;  %v773_v34 = vmul.f32 %v765_v24, %v749_v57 }
 0x266   : > { %v1038_v22 = vpop.eup %1037  ;;  %v721_v23 = vmul.f32 0.6931472, %v1036_v19 }
 0x267   : > { %v633_v21 = vadd.f32 %v1034_v10, %v632_v16  ;;  %v644_v28 = vmul.f32 %v1038_v22, %v544_v7  ;;  %vm649_vm7 = vweird.f32 %v1038_v22 }
 0x268   : > { %v733_v29 = vmax.f32 %v721_v23, -100.0  ;;  %vm650_vm10 = vmor %vm648_vm9, %vm649_vm7 }
 0x269   : > { %v637_v17 = vsel %vm636_vm4, %v1034_v10, %v633_v21  ;;  %v645_v31 = vsub.f32 1.0, %v644_v28 }
 0x26a   : > { %v642_v30 = vsel %vm639_vm5, %v641_v27, %v637_v17  ;;  %v741_v32 = vsub.f32 0.0, %v733_v29 }
 0x26b   : > { %v663_v36 = vmax.f32 %v642_v30, 0.0  ;;  %v646_v39 = vmul.f32 %v1038_v22, %v645_v31 }
 0x26c   : > { %v781_v53 = vmul.f32 %v773_v34, %v741_v32 }
 0x26d   : > { %v671_v41 = vmin.f32 %v663_v36, 1.0  ;;  %v647_v44 = vadd.f32 %v1038_v22, %v646_v39 }
 0x26e   : > { %v816_v45 = vsel %vm808_vm6, %v781_v53, 0.0 }
 0x26f   : > { %680 = vst.msk [vmem:[%s1192_s24 + $0x30] sm:$0xff] %vm673_vm13, %v671_v41  ;;  %v704_v46 = vsub.f32 1.0, %v671_v41  ;;  %v651_v43 = vsel %vm650_vm10, %v1038_v22, %v647_v44 }
 0x270   : > { %824 = vst.msk [vmem:[%s1269_s27 + $0x18] sm:$0xff] %vm673_vm13, %v816_v45  ;;  %v656_v42 = vsel %vm653_vm11, %v655_v33, %v651_v43 }
 0x271   : > { %v712_v47 = vsel %vm696_vm8, %v671_v41, %v704_v46  ;;  %v664_v52 = vmax.f32 %v656_v42, 0.0 }
 0x272   : > { %1039 = vlog2.f32 %v712_v47  ;;  %v752_v48 = vsub.f32 1.0, %v712_v47 }
 0x273   : > { %v672_v54 = vmin.f32 %v664_v52, 1.0 }
 0x274   : > { %v760_v55 = vmul.f32 %v752_v48, %v752_v48 }
 0x275   : > { %681 = vst.msk [vmem:[%s1192_s24 + $0x38] sm:$0xff] %vm673_vm13, %v672_v54  ;;  %v705_v51 = vsub.f32 1.0, %v672_v54 }
 0x276   : > { %v768_v15 = vmul.f32 %v760_v55, %v760_v55 }
 0x277   : > { %v713_v59 = vsel %vm697_vm12, %v672_v54, %v705_v51 }
 0x278   : > { %v1040_v58 = vpop.eup %1039  ;;  %1041 = vlog2.f32 %v713_v59  ;;  %v753_v61 = vsub.f32 1.0, %v713_v59  ;;  %v776_v1 = vmul.f32 %v768_v15, %v752_v48 }
 0x279   : > { %v727_v49 = vmul.f32 0.6931472, %v1040_v58 }
 0x27a   : > { %v761_v63 = vmul.f32 %v753_v61, %v753_v61 }
 0x27b   : > { %v736_v62 = vmax.f32 %v727_v49, -100.0 }
 0x27c   : > { %v769_v6 = vmul.f32 %v761_v63, %v761_v63 }
 0x27d   : > { %v744_v0 = vsub.f32 0.0, %v736_v62 }
 0x27e   : > { %v1042_v3 = vpop.eup %1041  ;;  %v777_v57 = vmul.f32 %v769_v6, %v753_v61 }
 0x27f   : > { %v784_v4 = vmul.f32 %v776_v1, %v744_v0  ;;  %v729_v5 = vmul.f32 0.6931472, %v1042_v3 }
 0x281   : > { %v819_v7 = vsel %vm811_vm14, %v784_v4, 0.0  ;;  %v737_v9 = vmax.f32 %v729_v5, -100.0 }
 0x282   : > { %827 = vst.msk [vmem:[%s1269_s27 + $0x30] sm:$0xff] %vm673_vm13, %v819_v7 }
 0x283   : > { %v745_v10 = vsub.f32 0.0, %v737_v9 }
 0x285   : > { %v785_v37 = vmul.f32 %v777_v57, %v745_v10 }
 0x287   : > { %v820_v11 = vsel %vm812_vm15, %v785_v37, 0.0 }
 0x288   : > { %828 = vst.msk [vmem:[%s1269_s27 + $0x38] sm:$0xff] %vm673_vm13, %v820_v11 }
 0x289 PF: > { %s16_s18 = sadd.s32 1, %s1049_s18  }
 0x28a   : > { %p13_p4 = scmp.ge.s32.totalorder %s16_s18, 6  }
 0x28c   :  { %15 = sbr.rel (!%p13_p4) target bundleno = 1 (0x1), region = 81 }

</bundles_post_ra>
